<compile_context>
chip_gen: v7x
topology: tpu7x:2x2x1
jax: 0.10.0
libtpu: 0.0.40
codegen_flags: <defaults>
</compile_context>

<pallas_src>
import functools

import jax
import jax.numpy as jnp
from jax.experimental import pallas as pl
from jax.experimental.pallas import tpu as pltpu


def _round_up(x, m):
    return (x + m - 1) // m * m


def _choose_tiles(n):
    """Pick (tile_m, tile_k, n_pad) for the A-streaming aggregation passes."""
    # Row tile: keep >= 2 row tiles so the 'parallel' axis gives both v7x TCs work.
    tile_m = 256 if n >= 1024 else 128
    n_pad = _round_up(n, tile_m)
    # Reduction tile (A DMA block width): largest multiple of tile_m that divides
    # n_pad and is <= 2048 -> up to 1 MiB bf16 A blocks per DMA.
    tile_k = tile_m
    for cand in range(2048, tile_m - 1, -tile_m):
        if cand <= n_pad and n_pad % cand == 0:
            tile_k = cand
            break
    return tile_m, tile_k, n_pad


# ---------------------------------------------------------------------------
# Kernel bodies
# ---------------------------------------------------------------------------
def _linear_kernel(x_ref, w_ref, o_ref):
    """o = x @ w   (row tile of the small input feature transform)."""
    o_ref[...] = jnp.dot(
        x_ref[...], w_ref[...], preferred_element_type=jnp.float32
    ).astype(o_ref.dtype)


def _agg_elu_w2_kernel(tile_k, f_resident, a_ref, f_ref, b1_ref, w2_ref, o_ref,
                       acc_ref):
    """Layer 1 + fused layer-2 linear:  o = ELU(A @ XW + b1) @ W2pad."""
    k = pl.program_id(1)

    @pl.when(k == 0)
    def _():
        acc_ref[...] = jnp.zeros_like(acc_ref)

    if f_resident:
        off = pl.multiple_of(k * tile_k, 128)
        f = f_ref[pl.ds(off, tile_k), :]
    else:
        f = f_ref[...]
    acc_ref[...] += jnp.dot(a_ref[...], f, preferred_element_type=jnp.float32)

    @pl.when(k == pl.num_programs(1) - 1)
    def _():
        h = acc_ref[...] + b1_ref[...]
        # ELU(alpha=1): clamp the exp argument so the not-taken branch never overflows.
        h = jnp.where(h > 0.0, h, jnp.exp(jnp.minimum(h, 0.0)) - 1.0)
        o_ref[...] = jnp.dot(
            h.astype(jnp.bfloat16), w2_ref[...],
            preferred_element_type=jnp.float32,
        ).astype(o_ref.dtype)


def _agg_logsoftmax_kernel(tile_k, f_resident, a_ref, f_ref, b2_ref, o_ref,
                           acc_ref):
    """Layer 2 aggregation:  o = log_softmax(A @ HW2 + b2pad)."""
    k = pl.program_id(1)

    @pl.when(k == 0)
    def _():
        acc_ref[...] = jnp.zeros_like(acc_ref)

    if f_resident:
        off = pl.multiple_of(k * tile_k, 128)
        f = f_ref[pl.ds(off, tile_k), :]
    else:
        f = f_ref[...]
    acc_ref[...] += jnp.dot(a_ref[...], f, preferred_element_type=jnp.float32)

    @pl.when(k == pl.num_programs(1) - 1)
    def _():
        o = acc_ref[...] + b2_ref[...]          # padded lanes carry bias = -1e30
        m = jnp.max(o, axis=1, keepdims=True)
        z = o - m
        lse = jnp.log(jnp.sum(jnp.exp(z), axis=1, keepdims=True))
        o_ref[...] = (z - lse).astype(o_ref.dtype)


# ---------------------------------------------------------------------------
# pallas_call wrappers
# ---------------------------------------------------------------------------
def _linear(x, w, *, tile_m):
    """Row-tiled  x[Np, Cin] @ w[Cin, Cpad]  ->  bf16 [Np, Cpad] (lane-dense)."""
    n, c_in = x.shape
    c_out = w.shape[1]
    return pl.pallas_call(
        _linear_kernel,
        out_shape=jax.ShapeDtypeStruct((n, c_out), jnp.bfloat16),
        grid_spec=pltpu.PrefetchScalarGridSpec(
            num_scalar_prefetch=0,
            grid=(n // tile_m,),
            in_specs=[
                pl.BlockSpec((tile_m, c_in), lambda i: (i, 0)),
                pl.BlockSpec((c_in, c_out), lambda i: (0, 0)),   # weights resident
            ],
            out_specs=pl.BlockSpec((tile_m, c_out), lambda i: (i, 0)),
        ),
        compiler_params=pltpu.CompilerParams(
            dimension_semantics=("parallel",),
        ),
    )(x, w)


def _aggregate(kernel, a, feat, consts, out_cols, out_dtype, *, tile_m, tile_k,
               f_resident):
    """Tiled  a[Np, Np] @ feat[Np, C]  with the kernel's fused epilogue."""
    n = a.shape[0]
    c = feat.shape[1]
    if f_resident:
        # Whole feature slab resident in VMEM: fetched once, no per-row-tile re-reads.
        f_spec = pl.BlockSpec((n, c), lambda i, k: (0, 0))
    else:
        f_spec = pl.BlockSpec((tile_k, c), lambda i, k: (k, 0))
    const_specs = [pl.BlockSpec(x.shape, lambda i, k: (0, 0)) for x in consts]
    return pl.pallas_call(
        functools.partial(kernel, tile_k, f_resident),
        out_shape=jax.ShapeDtypeStruct((n, out_cols), out_dtype),
        grid_spec=pltpu.PrefetchScalarGridSpec(
            num_scalar_prefetch=0,
            grid=(n // tile_m, n // tile_k),       # reduction (k) axis last
            in_specs=[
                pl.BlockSpec((tile_m, tile_k), lambda i, k: (i, k)),   # A tile
                f_spec,                                                # features
            ] + const_specs,                                           # bias (+W2)
            out_specs=pl.BlockSpec((tile_m, out_cols), lambda i, k: (i, 0)),
            scratch_shapes=[pltpu.VMEM((tile_m, c), jnp.float32)],
        ),
        compiler_params=pltpu.CompilerParams(
            dimension_semantics=("parallel", "arbitrary"),
            # Large-tile headroom; still well under v7x's 64 MiB/TC VMEM.
            vmem_limit_bytes=48 * 1024 * 1024,
        ),
    )(a, feat, *consts)


def gcn_forward(a_norm, x, w1, b1, w2, b2):
    """2-layer GCN: log_softmax(A @ (ELU(A @ (X @ W1) + b1) @ W2) + b2)."""
    n, _ = x.shape
    c_mid = w1.shape[1]
    c_out = w2.shape[1]

    tile_m, tile_k, n_pad = _choose_tiles(n)
    pad_n = n_pad - n
    c_mid_pad = _round_up(c_mid, 128)    # lane-dense layer-1 stores, MXU K=128
    c_out_pad = _round_up(c_out, 128)    # lane-dense final stores

    # Keep the feature slab fully VMEM-resident unless the graph is huge.
    f_resident = n_pad * max(c_mid_pad, c_out_pad) * 2 <= 8 * 1024 * 1024

    # --- pad + cast (plain JAX glue, outside the kernels) ---
    a_bf = jnp.pad(a_norm.astype(jnp.bfloat16), ((0, pad_n), (0, pad_n)))
    x_bf = jnp.pad(x.astype(jnp.float32), ((0, pad_n), (0, 0))).astype(jnp.bfloat16)
    # Zero-pad W1 columns / b1 lanes: padded H columns are exactly ELU(0)=0 and
    # contribute nothing through W2's zero-padded extra rows.
    w1_bf = jnp.pad(w1.astype(jnp.bfloat16), ((0, 0), (0, c_mid_pad - c_mid)))
    b1_f = jnp.pad(b1.reshape(1, c_mid).astype(jnp.float32),
                   ((0, 0), (0, c_mid_pad - c_mid)))
    w2_bf = jnp.pad(w2.astype(jnp.bfloat16),
                    ((0, c_mid_pad - c_mid), (0, c_out_pad - c_out)))
    # Padded logit lanes get a large negative bias so log_softmax ignores them.
    b2_f = jnp.concatenate(
        [b2.reshape(1, c_out).astype(jnp.float32),
         jnp.full((1, c_out_pad - c_out), -1e30, jnp.float32)],
        axis=1,
    )

    # --- layer 1 (+ fused layer-2 linear):  HW2 = ELU(A @ (X @ W1) + b1) @ W2 ---
    xw = _linear(x_bf, w1_bf, tile_m=tile_m)                         # [Np, 128] bf16
    hw2 = _aggregate(_agg_elu_w2_kernel, a_bf, xw, (b1_f, w2_bf),
                     c_out_pad, jnp.bfloat16,
                     tile_m=tile_m, tile_k=tile_k, f_resident=f_resident)

    # --- layer 2:  out = log_softmax(A @ HW2 + b2pad) ---
    o = _aggregate(_agg_logsoftmax_kernel, a_bf, hw2, (b2_f,),
                   c_out_pad, jnp.float32,
                   tile_m=tile_m, tile_k=tile_k, f_resident=f_resident)

    return o[:n, :c_out]


def normalize_adjacency(edge_index, num_nodes):
    """Glue (plain JAX): dense A_hat = D^{-1/2} (A + I) D^{-1/2} from an edge list."""
    src, dst = edge_index
    adj = jnp.zeros((num_nodes, num_nodes), jnp.float32)
    adj = adj.at[src, dst].set(1.0)
    adj = adj.at[dst, src].set(1.0)                       # undirected
    adj = adj + jnp.eye(num_nodes, dtype=jnp.float32)     # self loops
    deg = jnp.sum(adj, axis=1)
    d_inv_sqrt = 1.0 / jnp.sqrt(deg)
    return adj * d_inv_sqrt[:, None] * d_inv_sqrt[None, :]


if __name__ == "__main__":
    # Small deterministic problem: 200 nodes (pads to 256 -> (2, 1) aggregation grid),
    # 8 input features, 4 output classes.
    N, C_IN, C_MID, C_OUT = 200, 8, 64, 4

    key = jax.random.PRNGKey(0)
    k_x, k_w1, k_b1, k_w2, k_b2 = jax.random.split(key, 5)

    # Node features [N, C_in]
    x = jax.random.normal(k_x, (N, C_IN), jnp.float32)

    # Deterministic ring-graph adjacency list (edge_index style: [2, E]).
    nodes = jnp.arange(N)
    edge_index = jnp.stack([nodes, (nodes + 1) % N])
    a_norm = normalize_adjacency(edge_index, N)

    # Parameters (glorot-scaled normals).
    w1 = jax.random.normal(k_w1, (C_IN, C_MID), jnp.float32) * (2.0 / (C_IN + C_MID)) ** 0.5
    b1 = jax.random.normal(k_b1, (C_MID,), jnp.float32) * 0.01
    w2 = jax.random.normal(k_w2, (C_MID, C_OUT), jnp.float32) * (2.0 / (C_MID + C_OUT)) ** 0.5
    b2 = jax.random.normal(k_b2, (C_OUT,), jnp.float32) * 0.01

    out = gcn_forward(a_norm, x, w1, b1, w2, b2)
    out = jax.block_until_ready(out)

    # Reference (plain JAX) mirroring the kernel's bf16 operand casts / fusion order.
    bf = lambda v: v.astype(jnp.bfloat16).astype(jnp.float32)
    xw_r = bf(bf(x) @ bf(w1))
    h_r = bf(a_norm) @ xw_r + b1.reshape(1, -1)
    h_r = jnp.where(h_r > 0.0, h_r, jnp.exp(jnp.minimum(h_r, 0.0)) - 1.0)
    hw2_r = bf(bf(h_r) @ bf(w2))
    o_r = bf(a_norm) @ hw2_r + b2.reshape(1, -1)
    ref = jax.nn.log_softmax(o_r, axis=1)

    assert out.shape == (N, C_OUT)
    assert jnp.allclose(out, ref, atol=2e-2, rtol=2e-2), float(jnp.max(jnp.abs(out - ref)))

    print("KERNEL_OK")
</pallas_src>

<mosaic_0001>
module attributes {stable_mosaic.version = 11 : i64} {
  func.func @_linear_kernel(%arg0: i32, %arg1: memref<128x8xbf16, #tpu.memory_space<vmem>>, %arg2: memref<8x128xbf16, #tpu.memory_space<vmem>>, %arg3: memref<128x128xbf16, #tpu.memory_space<vmem>>) attributes {dimension_semantics = [#tpu.dimension_semantics<parallel>], iteration_bounds = array<i64: 2>, scalar_prefetch = 0 : i64, scratch_operands = 0 : i64, tpu.core_type = #tpu.core_type<tc>, window_params = [{transform_indices = @transform_0, window_bounds = array<i64: 128, 8>}, {pipeline_mode = #tpu.pipeline_mode<synchronous>, transform_indices = @transform_1, window_bounds = array<i64: 8, 128>}, {transform_indices = @transform_2, window_bounds = array<i64: 128, 128>}]} {
    %c0 = arith.constant 0 : index
    %c0_0 = arith.constant 0 : index
    %0 = vector.load %arg1[%c0, %c0_0] : memref<128x8xbf16, #tpu.memory_space<vmem>>, vector<128x8xbf16>
    %c0_1 = arith.constant 0 : index
    %c0_2 = arith.constant 0 : index
    %1 = vector.load %arg2[%c0_1, %c0_2] : memref<8x128xbf16, #tpu.memory_space<vmem>>, vector<8x128xbf16>
    %cst = arith.constant dense<0.000000e+00> : vector<128x128xf32>
    %2 = tpu.matmul %0, %1, %cst {dimension_numbers = #tpu.dot_dimension_numbers<[1], [0], [0], [1], [0, 0, 1, 1], [], []>} : vector<128x8xbf16>, vector<8x128xbf16>, vector<128x128xf32> -> vector<128x128xf32>
    %3 = arith.truncf %2 : vector<128x128xf32> to vector<128x128xbf16>
    %c0_3 = arith.constant 0 : index
    %c0_4 = arith.constant 0 : index
    %4 = vector.load %arg3[%c0_3, %c0_4] : memref<128x128xbf16, #tpu.memory_space<vmem>>, vector<128x128xbf16>
    tpu.vector_store %arg3[%c0_3, %c0_4], %3 {strides = array<i32>} : memref<128x128xbf16, #tpu.memory_space<vmem>>, vector<128x128xbf16>,
    return
  }
  func.func @transform_0(%arg0: i32) -> (i32, i32) {
    %c0_i32 = arith.constant 0 : i32
    %c0_i32_0 = arith.constant 0 : i32
    return %arg0, %c0_i32 : i32, i32
  }
  func.func @transform_1(%arg0: i32) -> (i32, i32) {
    %c0_i32 = arith.constant 0 : i32
    %c0_i32_0 = arith.constant 0 : i32
    %c0_i32_1 = arith.constant 0 : i32
    return %c0_i32, %c0_i32_0 : i32, i32
  }
  func.func @transform_2(%arg0: i32) -> (i32, i32) {
    %c0_i32 = arith.constant 0 : i32
    %c0_i32_0 = arith.constant 0 : i32
    return %arg0, %c0_i32 : i32, i32
  }
}

</mosaic_0001>

<bundles_post_ra>
// kernel: tpu_custom_call.1
= control target key start
LH: loop header
LB: loop body
LE: loop exit
PB: predicated region body
PF: predicated region fallthrough
CT: control target
= control target key end

     0   :  { %7 = vsyncpa [#allocation3], 0  ;;  %s872_s0 = inlined_call_operand.vmem [shape: bf16[256,8], index: 0, kind: input, shape index: {}]   ;;  %s873_s1 = inlined_call_operand.vmem [shape: bf16[8,128], index: 1, kind: input, shape index: {}]   ;;  %s874_s2 = inlined_call_operand.hbm [shape: bf16[256,128], index: 2, kind: output, shape index: {}]  }
   0x1   :  { %9 = vsyncpa [#allocation3 + $0x1], 0  ;;  %s755_s9 = smov 0   ;;  %s757_s10 = smov 0  }
   0x2   :  { %s759_s11 = smov 0   ;;  %s761_s12 = smov 0  }
   0x3 LB: > { %s776_s13 = sadd.s32 4294967295, %s735_s12   ;;  %s485_s14 = sadd.s32 4294967294, %s735_s12   ;;  %s735_s12 = sphi %s761_s12, %s880_s12   ;;  %s731_s11 = sphi %s759_s11, %s879_s11   ;;  %s727_s10 = sphi %s757_s10, %s878_s10   ;;  %s723_s9 = sphi %s755_s9, %s877_s9  }
   0x4   : > { %s780_s15 = sadd.s32 1, %s735_s12   ;;  %s69_s16 = sadd.s32 1, %s731_s11 }
   0x5   : > { %s66_s17 = ssub.s32 %s735_s12, %s780_s15  ;;  %p79_p0 = scmp.ne.s32.totalorder %s731_s11, %s727_s10 }
   0x6   : > { %p67_p1 = scmp.eq.s32.totalorder %s66_s17, 0  ;;  %p80_p2 = scmp.eq.s32.totalorder %s776_s13, 1 }
   0x7   : > { %p85_p3 = scmp.ne.s32.totalorder %s727_s10, %s723_s9  ;;  %p86_p4 = scmp.eq.s32.totalorder %s485_s14, 1 }
   0x8   : > { %s791_s18 = scalar_select %p67_p1, %s731_s11, %s69_s16  }
   0x9   : > { %p793_p5 = por %p80_p2, %p79_p0  ;;  %p797_p6 = por %p86_p4, %p85_p3 }
   0xa   : > { %p488_p7 = scmp.ge.s32.totalorder %s735_s12, 1  ;;  %p116_p8 = scmp.lt.s32.totalorder %s735_s12, 3 }
   0xc   : > { %p117_p9 = pnand %p488_p7, %p116_p8 }
   0xd   : > { %v162_v0 = vld [vmem:[%s873_s1] sm:$0xf] (!%p117_p9)  ;;  %vm228_vm0 = vcmask (!%p117_p9), 1043456   ;;  %s490_s23 = sshll.u32 (!%p117_p9), %s776_s13, 4  ;;  %vm203_vm1 = vcmask (!%p117_p9), 64512   ;;  %s135_s28 = sand.u32 (!%p117_p9), 1, %s727_s10  }
   0xe   : > { %120 = sbr.rel (%p117_p9) target bundleno = 267 (0x10b), region = 28  ;;  %622 = vmatprep.subr.msk.bf16.mxu0 (!%p117_p9), %vm228_vm0, %v162_v0  ;;  %623 = vmatprep.subr.msk.bf16.mxu1 (!%p117_p9), %vm228_vm0, %v162_v0  ;;  %v230_v1 = vsel (!%p117_p9), %vm228_vm0, %v162_v0, 0  ;;  %p139_p10 = scmp.lt.s32.totalorder (!%p117_p9), %s490_s23, 31 }
   0xf   : > { %603 = vmatpush3.bf16.msra.mxu0 (!%p117_p9), %v230_v1  ;;  %621 = vmatpush3.bf16.msra.mxu1 (!%p117_p9), %v230_v1  ;;  %s489_s29 = sshll.u32 (!%p117_p9), %s135_s28, 6  ;;  %s545_s3 = sshll.u32 (!%p117_p9), %s776_s13, 10 }
  0x10   : > { %s137_s30 = scalar_lea.vmem (!%p117_p9), [#allocation2], %s489_s29  ;;  %s825_s7 = scalar_lea.hbm (!%p117_p9), %s874_s2, %s545_s3 }
  0x11   : > { %s423_s4 = sshll.u32 (!%p117_p9), %s137_s30, 4  ;;  %s831_s8 = scalar_lea.sflag (!%p117_p9), [#allocation3], %s135_s28  ;;  %s827_s4 = int_to_ptr.vmem [resolvable:$true] %s423_s4 }
  0x12   : > { %s673_s13 = scalar_lea.vmem (!%p117_p9), %s827_s4, 1024  ;;  %s737_s14 = smov (!%p117_p9), [#allocation2]  }
  0x13   : > { %p674_p11 = scmp.ne.s32.totalorder (!%p117_p9), %s827_s4, %s673_s13  ;;  %s677_s16 = sshll.u32 (!%p117_p9), %s737_s14, 4  ;;  %s678_s16 = int_to_ptr.vmem [resolvable:$false] %s677_s16 }
  0x14   : > { %s679_s17 = scalar_lea.vmem (!%p117_p9), %s678_s16, 2048  ;;  %p680_p0 = scmp.lt.s32.totalorder (!%p117_p9), %s827_s4, %s678_s16 }
  0x15   : > { %s882_s23 = smov (!%p139_p10, %s490_s23), 31  ;;  %p675_p12 = pnand %p674_p11, %p793_p5 }
  0x16   : > { %s491_s24 = sshll.u32 %s882_s23, 2  ;;  %p681_p1 = scmp.lt.s32.totalorder %s679_s17, %s673_s13 }
  0x17   : > { %s142_s27 = scalar_lea.vmem %s872_s0, %s491_s24  ;;  %p676_p13 = pneg %p675_p12 }
  0x18   : > { %v665_v2 = vld [vmem:[%s142_s27] sm:$0xff]   ;;  %v667_v4 = vld [vmem:[%s142_s27 + $0x8] sm:$0xff]   ;;  %v669_v6 = vld [vmem:[%s142_s27 + $0x10] sm:$0xff]   ;;  %p682_p2 = por %p681_p1, %p680_p0 }
  0x19   : > { %v666_v3 = vld [vmem:[%s142_s27 + $0x20] sm:$0xff]   ;;  %604 = vmatprep.mubr.msk.bf16.mxu0 %vm203_vm1, %v665_v2  ;;  %v668_v5 = vld [vmem:[%s142_s27 + $0x28] sm:$0xff]   ;;  %v670_v7 = vld [vmem:[%s142_s27 + $0x30] sm:$0xff]  }
  0x1a   : > { %612 = vmatprep.mubr.msk.bf16.mxu1 %vm203_vm1, %v666_v3  ;;  %605 = vmatmul.mubr.msk.bf16.vlgmr.msra.gmra.mrb[0].mxu0 %vm203_vm1, %v667_v4  ;;  %v671_v8 = vld [vmem:[%s142_s27 + $0x18] sm:$0xff]   ;;  %p683_p3 = pnand %p682_p2, %p676_p13 }
  0x1b   : > { %613 = vmatmul.mubr.msk.bf16.vlgmr.msra.gmra.mrb[0].mxu1 %vm203_vm1, %v668_v5  ;;  %608 = vmatprep.mubr.msk.bf16.mxu0 %vm203_vm1, %v669_v6  ;;  %v672_v9 = vld [vmem:[%s142_s27 + $0x38] sm:$0xff]  }
  0x1c   : > { %616 = vmatprep.mubr.msk.bf16.mxu1 %vm203_vm1, %v670_v7 }
  0x22   : > { %609 = vmatmul.mubr.msk.bf16.gmra.mrb[4].mxu0 %vm203_vm1, %v671_v8 }
  0x23   : > { %617 = vmatmul.mubr.msk.bf16.gmra.mrb[4].mxu1 %vm203_vm1, %v672_v9 }
  0xed   : > { %v606_v10 = vpop.f32.mrb[0].mxu0 }
  0xee   : > { %v614_v11 = vpop.f32.mrb[0].mxu1  ;;  %v266_v12 = vpop.f32.mrb[1].mxu0 }
  0xef   : > { %v298_v13 = vpop.f32.mrb[1].mxu1  ;;  %v607_v14 = vpop.f32.mrb[2].mxu0 }
  0xf0   : > { %v554_v15 = vpack.c.bf16 %v607_v14, %v606_v10  ;;  %v615_v16 = vpop.f32.mrb[2].mxu1  ;;  %v269_v17 = vpop.f32.mrb[3].mxu0 }
  0xf1   : > { %v574_v18 = vpack.c.bf16 %v615_v16, %v614_v11  ;;  %v549_v19 = vpack.c.bf16 %v269_v17, %v266_v12  ;;  %v301_v20 = vpop.f32.mrb[3].mxu1 }
  0xf2   : > { %586 = vst [vmem:[%s137_s30 + $0x8] sm:$0xff] %v554_v15   ;;  %v569_v21 = vpack.c.bf16 %v301_v20, %v298_v13 }
  0xf3   : > { %590 = vst [vmem:[%s137_s30 + $0x28] sm:$0xff] %v574_v18   ;;  %550 = vst [vmem:[%s137_s30] sm:$0xff] %v549_v19  }
  0xf4   : > { %589 = vst [vmem:[%s137_s30 + $0x20] sm:$0xff] %v569_v21  }
  0xf5   : > { %v610_v22 = vpop.f32.mrb[4].mxu0 }
  0xf6   : > { %v618_v23 = vpop.f32.mrb[4].mxu1  ;;  %v282_v24 = vpop.f32.mrb[5].mxu0 }
  0xf7   : > { %v314_v25 = vpop.f32.mrb[5].mxu1  ;;  %v611_v26 = vpop.f32.mrb[6].mxu0 }
  0xf8   : > { %v564_v27 = vpack.c.bf16 %v611_v26, %v610_v22  ;;  %v619_v28 = vpop.f32.mrb[6].mxu1  ;;  %v285_v29 = vpop.f32.mrb[7].mxu0 }
  0xf9   : > { %v584_v30 = vpack.c.bf16 %v619_v28, %v618_v23  ;;  %v559_v31 = vpack.c.bf16 %v285_v29, %v282_v24  ;;  %v317_v32 = vpop.f32.mrb[7].mxu1 }
  0xfa   : > { %588 = vst [vmem:[%s137_s30 + $0x18] sm:$0xff] %v564_v27   ;;  %v579_v33 = vpack.c.bf16 %v317_v32, %v314_v25 }
  0xfb   : > { %592 = vst [vmem:[%s137_s30 + $0x38] sm:$0xff] %v584_v30   ;;  %587 = vst [vmem:[%s137_s30 + $0x10] sm:$0xff] %v559_v31  }
  0xfc   : > { %591 = vst [vmem:[%s137_s30 + $0x30] sm:$0xff] %v579_v33  }
  0xfd   : > { %686 = shalt.err (!%p683_p3)
}
  0xfe   : > { %s687_s21 = scalar_lea.hbm %s825_s7, 1024  ;;  %s691_s24 = scalar_lea.hbm %s874_s2, 2048 }
  0xff   : > { %p688_p4 = scmp.ne.s32.totalorder %s825_s7, %s687_s21  ;;  %p692_p9 = scmp.lt.u32.totalorder %s825_s7, %s874_s2 }
 0x100   : > { %p693_p10 = scmp.lt.u32.totalorder %s691_s24, %s687_s21  ;;  %p695_p12 = scmp.lt.u32.totalorder %s687_s21, %s825_s7 }
 0x101   : > { %p689_p7 = pnand %p688_p4, %p793_p5 }
 0x102   : > { %p694_p11 = por %p693_p10, %p692_p9 }
 0x103   : > { %p690_p8 = pneg %p689_p7 }
 0x104   : > { %p696_p13 = por %p695_p12, %p694_p11 }
 0x106   : > { %p697_p0 = pnand %p696_p13, %p690_p8 }
 0x108   : > { %700 = shalt.err (!%p697_p0)
}
 0x109   : > { %s738_s27 = smov 64   ;;  %s739_s28 = smov 4  }
 0x10a   : > { %624 = dma.vmem_to_hbm [thread:$0]  (%p793_p5), %s827_s4, 1024, %s825_s7, %s831_s8, %s738_s27, %s738_s27, %s739_s28  }
 0x10b PF: > { %p630_p1 = scmp.ge.s32.totalorder %s735_s12, 2  ;;  %s438_s29 = sand.u32 1, %s723_s9  }
 0x10c   : > { %s439_s30 = scalar_lea.sflag [#allocation3], %s438_s29 }
 0x10d   : > { %p627_p2 = pnand %p630_p1, %p797_p6 }
 0x10f   : > { %718 = dma.done.wait (!%p627_p2), %s439_s30, 1024  }
 0x110   : > { %720 = vsyncadd (!%p627_p2), %s439_s30, 4294966272  ;;  %p12_p3 = scmp.ge.s32.totalorder %s780_s15, 4   ;;  %s877_s9 = smov %s727_s10 }
 0x111   : > { %s878_s10 = smov %s731_s11  ;;  %s879_s11 = smov %s791_s18 }
 0x112   : > { %s880_s12 = smov %s780_s15  ;;  %14 = sbr.rel (!%p12_p3) target bundleno = 3 (0x3), region = 63 }
 0x119   :  { %444 = vsyncpa [#allocation3], 1 }
 0x11a   :  { %446 = vsyncpa [#allocation3 + $0x1], 1 }

</bundles_post_ra>
